<compile_context>
chip_gen: v7x
topology: tpu7x:2x2x1
jax: 0.10.0
libtpu: 0.0.40
codegen_flags: <defaults>
</compile_context>

<pallas_src>
import jax
import jax.numpy as jnp
from jax.experimental import pallas as pl
from jax.experimental.pallas import tpu as pltpu

_LANE = 128       # TPU lane width (last dim)
_SUBLANE = 8      # f32 sublane granularity (second-to-last dim)


def _round_up(x, m):
    return (x + m - 1) // m * m


def prepare_params(weight, bias, *, param_dtype=jnp.bfloat16):
    """One-time parameter prep (hoisted out of the per-call hot path).

    weight: [D_out, D_in] (PyTorch nn.Linear layout), bias: [D_out].
    Returns (w_t_padded [D_in, D_out_p] param_dtype, bias_padded [1, D_out_p] f32, D_out).
    """
    d_out, d_in = weight.shape
    d_out_p = _round_up(d_out, _LANE)
    w_t = jnp.zeros((d_in, d_out_p), dtype=param_dtype)
    w_t = w_t.at[:, :d_out].set(weight.T.astype(param_dtype))
    b = jnp.zeros((1, d_out_p), dtype=jnp.float32)
    b = b.at[:, :d_out].set(bias.astype(jnp.float32))
    return w_t, b, d_out


def _linear_kernel(x_ref, w_ref, b_ref, o_ref):
    # x_ref: (TM, D_in), w_ref: (D_in, D_out_p) bf16, b_ref: (1, D_out_p) f32,
    # o_ref: (TM, D_out_p).
    # Cast activations to the weight dtype so the MXU runs at its native bf16
    # rate; accumulate in f32; bias add in f32 on the VPU (no bf16 VPU on v5e).
    x = x_ref[...].astype(w_ref.dtype)
    acc = jnp.dot(x, w_ref[...], preferred_element_type=jnp.float32)
    o_ref[...] = (acc + b_ref[...]).astype(o_ref.dtype)


def _pick_row_tile(rows, d_in, d_out_p, x_itemsize):
    """Largest reasonable row tile: multiple of 8, VMEM-budget capped,
    and >= 2 grid steps when the input is big enough (v7x megacore)."""
    # Per-row VMEM cost: double-buffered x block + double-buffered f32 out block.
    per_row_bytes = 2 * d_in * x_itemsize + 2 * d_out_p * 4
    budget = 16 * 1024 * 1024  # stay well under the 32 MiB scoped limit (v6e/v7x)
    cap = max(_SUBLANE, min(2048, (budget // per_row_bytes) // _SUBLANE * _SUBLANE))
    if rows <= _SUBLANE:
        return rows  # tiny input: one full block (full-dim exception to (8,128) rule)
    # Aim for at least two grid steps so both v7x TensorCores get work.
    half = _round_up(pl.cdiv(rows, 2), _SUBLANE)
    return int(min(512, cap, half))


def input_process(x, w_t_padded, bias_padded, d_out, *, row_tile=None):
    """x: [T, B, D_in]; w_t_padded: [D_in, D_out_p]; bias_padded: [1, D_out_p].

    Returns [T, B, d_out] in x.dtype.
    """
    T, B, d_in = x.shape
    d_out_p = w_t_padded.shape[1]
    rows = T * B

    x2d = x.reshape(rows, d_in)

    if row_tile is None:
        row_tile = _pick_row_tile(rows, d_in, d_out_p, x2d.dtype.itemsize)
    else:
        if row_tile != rows and row_tile % _SUBLANE != 0:
            raise ValueError("row_tile must equal T*B or be a multiple of 8")

    grid = (pl.cdiv(rows, row_tile),)

    cost = pl.CostEstimate(
        flops=2 * rows * d_in * d_out_p,
        transcendentals=0,
        bytes_accessed=(
            rows * d_in * x2d.dtype.itemsize
            + d_in * d_out_p * w_t_padded.dtype.itemsize
            + d_out_p * 4
            + rows * d_out_p * x.dtype.itemsize
        ),
    )

    out2d = pl.pallas_call(
        _linear_kernel,
        out_shape=jax.ShapeDtypeStruct((rows, d_out_p), x.dtype),
        grid_spec=pl.GridSpec(
            grid=grid,
            in_specs=[
                pl.BlockSpec((row_tile, d_in), lambda i: (i, 0)),
                pl.BlockSpec((d_in, d_out_p), lambda i: (0, 0)),
                pl.BlockSpec((1, d_out_p), lambda i: (0, 0)),
            ],
            out_specs=pl.BlockSpec((row_tile, d_out_p), lambda i: (i, 0)),
        ),
        compiler_params=pltpu.CompilerParams(
            dimension_semantics=("parallel",),
            vmem_limit_bytes=32 * 1024 * 1024,
        ),
        cost_estimate=cost,
    )(x2d, w_t_padded, bias_padded)

    # Slice away the lane padding and restore [T, B, d_out].
    return out2d[:, :d_out].reshape(T, B, d_out)


if __name__ == "__main__":
    # Small shapes consistent with the module's forward: x: [T, B, input_feats]
    T, B = 8, 2
    input_feats, latent_dim = 32, 64

    key = jax.random.PRNGKey(0)
    kx, kw, kb = jax.random.split(key, 3)

    x = jax.random.normal(kx, (T, B, input_feats), dtype=jnp.float32)
    # Deterministic "nn.Linear"-like parameters (synthetic, not a checkpoint).
    bound = 1.0 / (input_feats ** 0.5)
    weight = jax.random.uniform(
        kw, (latent_dim, input_feats), minval=-bound, maxval=bound, dtype=jnp.float32
    )
    bias = jax.random.uniform(
        kb, (latent_dim,), minval=-bound, maxval=bound, dtype=jnp.float32
    )

    # One-time parameter prep (transpose + lane-pad + bf16 cast), outside hot path.
    w_t_p, b_p, d_out = prepare_params(weight, bias)

    out = input_process(x, w_t_p, b_p, d_out)
    out = jax.block_until_ready(out)

    assert out.shape == (T, B, latent_dim)

    # Reference matching the kernel's numerics (bf16 operands, f32 accumulate).
    ref_bf16 = (
        jnp.dot(
            x.astype(jnp.bfloat16).reshape(-1, input_feats),
            weight.T.astype(jnp.bfloat16),
            preferred_element_type=jnp.float32,
        )
        + bias
    ).reshape(T, B, latent_dim)
    assert jnp.allclose(out, ref_bf16, atol=1e-5, rtol=1e-5)

    # Sanity check against the exact f32 PyTorch semantics (loose tol for bf16).
    ref_f32 = x @ weight.T + bias
    assert jnp.allclose(out, ref_f32, atol=3e-2, rtol=3e-2)

    print("KERNEL_OK")
</pallas_src>

<mosaic_0001>
module attributes {stable_mosaic.version = 11 : i64} {
  func.func @_linear_kernel(%arg0: i32, %arg1: memref<8x32xf32, #tpu.memory_space<vmem>>, %arg2: memref<32x128xbf16, #tpu.memory_space<vmem>>, %arg3: memref<1x128xf32, #tpu.memory_space<vmem>>, %arg4: memref<8x128xf32, #tpu.memory_space<vmem>>) attributes {dimension_semantics = [#tpu.dimension_semantics<parallel>], iteration_bounds = array<i64: 2>, scalar_prefetch = 0 : i64, scratch_operands = 0 : i64, tpu.core_type = #tpu.core_type<tc>, window_params = [{transform_indices = @transform_0, window_bounds = array<i64: 8, 32>}, {pipeline_mode = #tpu.pipeline_mode<synchronous>, transform_indices = @transform_1, window_bounds = array<i64: 32, 128>}, {pipeline_mode = #tpu.pipeline_mode<synchronous>, transform_indices = @transform_2, window_bounds = array<i64: 1, 128>}, {transform_indices = @transform_3, window_bounds = array<i64: 8, 128>}]} {
    %c0 = arith.constant 0 : index
    %c0_0 = arith.constant 0 : index
    %0 = vector.load %arg1[%c0, %c0_0] : memref<8x32xf32, #tpu.memory_space<vmem>>, vector<8x32xf32>
    %1 = arith.truncf %0 : vector<8x32xf32> to vector<8x32xbf16>
    %c0_1 = arith.constant 0 : index
    %c0_2 = arith.constant 0 : index
    %2 = vector.load %arg2[%c0_1, %c0_2] : memref<32x128xbf16, #tpu.memory_space<vmem>>, vector<32x128xbf16>
    %cst = arith.constant dense<0.000000e+00> : vector<8x128xf32>
    %3 = tpu.matmul %1, %2, %cst {dimension_numbers = #tpu.dot_dimension_numbers<[1], [0], [0], [1], [0, 0, 1, 1], [], []>} : vector<8x32xbf16>, vector<32x128xbf16>, vector<8x128xf32> -> vector<8x128xf32>
    %c0_3 = arith.constant 0 : index
    %c0_4 = arith.constant 0 : index
    %4 = vector.load %arg3[%c0_3, %c0_4] : memref<1x128xf32, #tpu.memory_space<vmem>>, vector<1x128xf32>
    %5 = vector.broadcast %4 : vector<1x128xf32> to vector<8x128xf32>
    %6 = arith.addf %3, %5 : vector<8x128xf32>
    %c0_5 = arith.constant 0 : index
    %c0_6 = arith.constant 0 : index
    %7 = vector.load %arg4[%c0_5, %c0_6] : memref<8x128xf32, #tpu.memory_space<vmem>>, vector<8x128xf32>
    tpu.vector_store %arg4[%c0_5, %c0_6], %6 {strides = array<i32>} : memref<8x128xf32, #tpu.memory_space<vmem>>, vector<8x128xf32>,
    return
  }
  func.func @transform_0(%arg0: i32) -> (i32, i32) {
    %c0_i32 = arith.constant 0 : i32
    %c0_i32_0 = arith.constant 0 : i32
    return %arg0, %c0_i32 : i32, i32
  }
  func.func @transform_1(%arg0: i32) -> (i32, i32) {
    %c0_i32 = arith.constant 0 : i32
    %c0_i32_0 = arith.constant 0 : i32
    %c0_i32_1 = arith.constant 0 : i32
    return %c0_i32, %c0_i32_0 : i32, i32
  }
  func.func @transform_2(%arg0: i32) -> (i32, i32) {
    %c0_i32 = arith.constant 0 : i32
    %c0_i32_0 = arith.constant 0 : i32
    %c0_i32_1 = arith.constant 0 : i32
    return %c0_i32, %c0_i32_0 : i32, i32
  }
  func.func @transform_3(%arg0: i32) -> (i32, i32) {
    %c0_i32 = arith.constant 0 : i32
    %c0_i32_0 = arith.constant 0 : i32
    return %arg0, %c0_i32 : i32, i32
  }
}

</mosaic_0001>

<bundles_post_ra>
// kernel: tpu_custom_call.1
= control target key start
LH: loop header
LB: loop body
LE: loop exit
PB: predicated region body
PF: predicated region fallthrough
CT: control target
= control target key end

     0   :  { %8 = vsyncpa [#allocation3], 0  ;;  %s814_s0 = inlined_call_operand.hbm [shape: f32[16,32], index: 0, kind: input, shape index: {}]   ;;  %s815_s1 = inlined_call_operand.hbm [shape: bf16[32,128], index: 1, kind: input, shape index: {}]   ;;  %s816_s2 = inlined_call_operand.vmem [shape: f32[1,128], index: 2, kind: input, shape index: {}]   ;;  %s817_s3 = inlined_call_operand.hbm [shape: f32[16,128], index: 3, kind: output, shape index: {}]  }
   0x1   :  { %10 = vsyncpa [#allocation3 + $0x1], 0 }
   0x2   :  { %11 = vsyncpa [#allocation6], 0 }
   0x3   :  { %12 = vsyncpa [#allocation4], 0 }
   0x4   :  { %14 = vsyncpa [#allocation4 + $0x1], 0  ;;  %s615_s12 = smov 0   ;;  %s617_s13 = smov 0  }
   0x5   :  { %s619_s14 = smov 0   ;;  %s621_s15 = smov 0  }
   0x6 LB: > { %s636_s16 = sadd.s32 4294967295, %s586_s15   ;;  %s366_s17 = sadd.s32 4294967294, %s586_s15   ;;  %s586_s15 = sphi %s621_s15, %s837_s15   ;;  %s582_s14 = sphi %s619_s14, %s836_s14   ;;  %s578_s13 = sphi %s617_s13, %s835_s13   ;;  %s574_s12 = sphi %s615_s12, %s834_s12  }
   0x7   : > { %p40_p0 = scmp.ne.s32.totalorder %s578_s13, %s574_s12  ;;  %p818_p1 = scmp.eq.s32.totalorder %s636_s16, 0 }
   0x8   : > { %p112_p3 = scmp.eq.s32.totalorder %s366_s17, 1  ;;  %p367_p5 = scmp.ge.s32.totalorder %s586_s15, 1 }
   0x9   : > { %p645_p4 = por %p818_p1, %p40_p0  ;;  %p119_p7 = scmp.lt.s32.totalorder %s586_s15, 3 }
   0xa   : > { %p650_p6 = por %p112_p3, %p40_p0  ;;  %s588_s21 = smov [#allocation5]  }
   0xb   : > { %s821_s18 = scalar_select %p645_p4, 1, 0 }
   0xc   : > { %s822_s19 = scalar_select %p650_p6, 1, 0 }
   0xd   : > { %p655_p8 = pnand %p367_p5, %p119_p7  ;;  %s131_s22 = sshll.u32 %s588_s21, 4  ;;  %s659_s22 = int_to_ptr.vmem [resolvable:$true] %s131_s22 }
   0xe   : > { %s671_s24 = sadd.s32 1, %s586_s15   ;;  %s27_s25 = sadd.s32 1, %s582_s14 }
   0xf   : > { %s823_s20 = scalar_select %p655_p8, 1, 0 }
  0x10   : > { %p403_p9 = pneg %p655_p8  ;;  %s24_s26 = ssub.s32 %s586_s15, %s671_s24 }
  0x11   : > { %s458_s29 = scalar_lea.hbm %s815_s1, 256 }
  0x12   : > { %p666_p11 = pnand %p403_p9, %p818_p1  ;;  %p459_p12 = scmp.ne.s32.totalorder %s815_s1, %s458_s29 }
  0x13   : > { %p465_p5 = scmp.lt.u32.totalorder %s458_s29, %s815_s1 }
  0x14   : > { %p460_p13 = pneg %p666_p11 }
  0x16   : > { %p461_p0 = pnand %p460_p13, %p459_p12 }
  0x18   : > { %p462_p3 = pneg %p461_p0 }
  0x1a   : > { %p467_p7 = pnand %p465_p5, %p462_p3 }
  0x1c   : > { %470 = shalt.err (!%p467_p7)
}
  0x1d   : > { %s471_s7 = scalar_lea.vmem %s659_s22, 256  ;;  %p479_p2 = scmp.lt.s32.totalorder %s659_s22, %s659_s22 }
  0x1e   : > { %p472_p9 = scmp.ne.s32.totalorder %s659_s22, %s471_s7  ;;  %p480_p6 = scmp.lt.s32.totalorder %s471_s7, %s471_s7 }
  0x20   : > { %p474_p10 = pnand %p472_p9, %p460_p13  ;;  %p481_p4 = por %p480_p6, %p479_p2 }
  0x22   : > { %p475_p1 = pneg %p474_p10 }
  0x24   : > { %p482_p8 = pnand %p481_p4, %p475_p1 }
  0x26   : > { %485 = shalt.err (!%p482_p8)
}
  0x27   : > { %s589_s8 = smov 64   ;;  %s590_s9 = smov 4  }
  0x28   : > { %406 = dma.hbm_to_vmem [thread:$0]  (!%p666_p11), %s815_s1, 256, %s659_s22, [#allocation6], %s589_s8, %s589_s8, %s590_s9  }
  0x29   : > { %p25_p2 = scmp.eq.s32.totalorder %s24_s26, 0  ;;  %p34_p1 = scmp.ne.s32.totalorder %s582_s14, %s578_s13 }
  0x2a   : > { %p35_p4 = scmp.eq.s32.totalorder %s586_s15, 0  ;;  %p416_p6 = scmp.lt.s32.totalorder %s586_s15, 2 }
  0x2b   : > { %s702_s17 = scalar_select %p25_p2, %s582_s14, %s27_s25  }
  0x2c   : > { %p36_p8 = por %p35_p4, %p34_p1  ;;  %p825_p10 = scmp.eq.s32.totalorder %s636_s16, 1 }
  0x2d   : > { %s148_s27 = sand.u32 1, %s582_s14   ;;  %s371_s28 = sshll.u32 %s586_s15, 7 }
  0x2e   : > { %p706_p12 = por %p825_p10, %p34_p1  ;;  %s370_s29 = sshll.u32 %s148_s27, 3 }
  0x2f   : > { %s715_s4 = scalar_lea.hbm %s814_s0, %s371_s28  ;;  %s152_s22 = scalar_lea.vmem [#allocation2], %s370_s29 }
  0x30   : > { %s159_s25 = sshll.u32 %s152_s22, 4  ;;  %p717_p11 = pnand %p416_p6, %p36_p8  ;;  %s721_s25 = int_to_ptr.vmem [resolvable:$true] %s159_s25 }
  0x31   : > { %s149_s5 = scalar_lea.sflag [#allocation3], %s148_s27  ;;  %s486_s6 = scalar_lea.hbm %s715_s4, 128 }
  0x32   : > { %p487_p13 = scmp.ne.s32.totalorder %s715_s4, %s486_s6  ;;  %p488_p0 = pneg %p717_p11 }
  0x33   : > { %s491_s9 = scalar_lea.hbm %s814_s0, 256  ;;  %p492_p7 = scmp.lt.u32.totalorder %s715_s4, %s814_s0 }
  0x34   : > { %p489_p3 = pnand %p488_p0, %p487_p13  ;;  %p493_p9 = scmp.lt.u32.totalorder %s491_s9, %s486_s6 }
  0x35   : > { %p495_p1 = scmp.lt.u32.totalorder %s486_s6, %s715_s4 }
  0x36   : > { %p490_p5 = pneg %p489_p3  ;;  %p494_p2 = por %p493_p9, %p492_p7 }
  0x38   : > { %p496_p4 = por %p495_p1, %p494_p2 }
  0x3a   : > { %p497_p6 = pnand %p496_p4, %p490_p5 }
  0x3c   : > { %500 = shalt.err (!%p497_p6)
}
  0x3d   : > { %s501_s27 = scalar_lea.vmem %s721_s25, 128  ;;  %s591_s28 = smov [#allocation2]  }
  0x3e   : > { %p502_p8 = scmp.ne.s32.totalorder %s721_s25, %s501_s27  ;;  %s506_s29 = sshll.u32 %s591_s28, 4  ;;  %s507_s29 = int_to_ptr.vmem [resolvable:$false] %s506_s29 }
  0x3f   : > { %s508_s23 = scalar_lea.vmem %s507_s29, 256  ;;  %p509_p3 = scmp.lt.s32.totalorder %s721_s25, %s507_s29 }
  0x40   : > { %p504_p10 = pnand %p502_p8, %p488_p0  ;;  %p510_p7 = scmp.lt.s32.totalorder %s508_s23, %s501_s27 }
  0x42   : > { %p505_p13 = pneg %p504_p10  ;;  %p511_p9 = por %p510_p7, %p509_p3 }
  0x44   : > { %p512_p2 = pnand %p511_p9, %p505_p13 }
  0x46   : > { %515 = shalt.err (!%p512_p2)
}
  0x47   : > { %410 = dma.hbm_to_vmem [thread:$0]  (!%p717_p11), %s715_s4, 128, %s721_s25, %s149_s5  }
  0x48   : > { %p828_p5 = scmp.ne.s32.totalorder %s823_s20, 0 }
  0x49   : > { %s751_s30 = sand.u32 (!%p828_p5), 1, %s578_s13   ;;  %p829_p0 = scmp.ne.s32.totalorder (!%p828_p5), %s821_s18, 0 }
  0x4a   : > { %168 = sbr.rel (%p828_p5) target bundleno = 322 (0x142), region = 32  ;;  %s373_s22 = sshll.u32 (!%p828_p5), %s751_s30, 3 }
  0x4b   : > { %s171_s6 = scalar_lea.sflag (!%p828_p5), [#allocation3], %s751_s30  ;;  %s174_s7 = scalar_lea.vmem (!%p828_p5), [#allocation2], %s373_s22 }
  0x51   : > { %561 = dma.done.wait (%p829_p0), %s171_s6, 128  }
  0x52   : > { %563 = vsyncadd (%p829_p0), %s171_s6, 4294967168  ;;  %p830_p1 = scmp.eq.s32.totalorder %s636_s16, 0 }
  0x54   : > { %565 = dma.done.wait (%p830_p1), [#allocation6], 256   ;;  %p831_p11 = pmov %p830_p1 }
  0x55   : > { %v592_v0 = vmov 0.0   ;;  %vm593_vm0 = vmmov 0   ;;  %v456_v1 = vld [vmem:[#allocation5] sm:$0xff]   ;;  %v457_v2 = vld [vmem:[#allocation5 + $0x8] sm:$0xff]   ;;  %v202_v3 = vld [vmem:[%s174_s7] sm:$0xff]  ;;  %vm227_vm1 = vcmask 261120  }
  0x56   : > { %567 = vsyncadd (%p831_p11), [#allocation6], 4294967040  ;;  %387 = vmatprep.subr.bf16.mxu0 %v592_v0  ;;  %391 = vmatprep.mubr.msk.bf16.mxu0 %vm593_vm0, %v592_v0  ;;  %v203_v4 = vpack.c.bf16 %v202_v3, %v202_v3  ;;  %v376_v5 = vld [vmem:[%s816_s2] ss:$0 sm:$0xff]  ;;  %s381_s4 = sshll.u32 %s636_s16, 7  ;;  %s200_s25 = scalar_lea.vmem [#allocation7], %s373_s22 }
  0x57   : > { %388 = vmatpush3.bf16.msra.mxu0 %v456_v1  ;;  %s286_s26 = sshll.u32 %s200_s25, 4  ;;  %s770_s9 = scalar_lea.hbm %s817_s3, %s381_s4  ;;  %s772_s26 = int_to_ptr.vmem [resolvable:$true] %s286_s26 }
  0x58   : > { %389 = vmatprep.subr.bf16.mxu0 %v592_v0  ;;  %s273_s10 = scalar_lea.sflag [#allocation4], %s751_s30  ;;  %s516_s16 = scalar_lea.vmem %s772_s26, 128 }
  0x59   : > { %p517_p4 = scmp.ne.s32.totalorder %s772_s26, %s516_s16  ;;  %s594_s11 = smov [#allocation7]  }
  0x5a   : > { %s520_s27 = sshll.u32 %s594_s11, 4  ;;  %s521_s27 = int_to_ptr.vmem [resolvable:$false] %s520_s27 }
  0x5b   : > { %390 = vmatpush3.bf16.msra.mxu0 %v457_v2  ;;  %p518_p6 = pnand %p517_p4, %p706_p12  ;;  %s522_s28 = scalar_lea.vmem %s521_s27, 256 }
  0x5c   : > { %p523_p10 = scmp.lt.s32.totalorder %s772_s26, %s521_s27  ;;  %p524_p13 = scmp.lt.s32.totalorder %s522_s28, %s516_s16 }
  0x5d   : > { %p519_p8 = pneg %p518_p6 }
  0x5e   : > { %392 = vmatmul.mubr.msk.bf16.vlgmr.msra.gmra.mrb[0].mxu0 %vm227_vm1, %v203_v4  ;;  %p525_p3 = por %p524_p13, %p523_p10 }
  0x60   : > { %p526_p7 = pnand %p525_p3, %p519_p8 }
 0x131   : > { %v265_v6 = vpop.f32.mrb[0].mxu0 }
 0x132   : > { %v266_v7 = vadd.f32 %v376_v5, %v265_v6  ;;  %v393_v8 = vpop.f32.mrb[1].mxu0 }
 0x133   : > { %v268_v9 = vpop.f32.mrb[2].mxu0 }
 0x134   : > { %271 = vst [vmem:[%s200_s25] sm:$0xff] %v266_v7  ;;  %v394_v10 = vpop.f32.mrb[3].mxu0 }
 0x135   : > { %529 = shalt.err (!%p526_p7)
}
 0x136   : > { %s530_s29 = scalar_lea.hbm %s770_s9, 128  ;;  %s534_s22 = scalar_lea.hbm %s817_s3, 256 }
 0x137   : > { %p531_p9 = scmp.ne.s32.totalorder %s770_s9, %s530_s29  ;;  %p535_p0 = scmp.lt.u32.totalorder %s770_s9, %s817_s3 }
 0x138   : > { %p536_p1 = scmp.lt.u32.totalorder %s534_s22, %s530_s29  ;;  %p538_p4 = scmp.lt.u32.totalorder %s530_s29, %s770_s9 }
 0x139   : > { %p532_p2 = pnand %p531_p9, %p706_p12 }
 0x13a   : > { %p537_p11 = por %p536_p1, %p535_p0 }
 0x13b   : > { %p533_p5 = pneg %p532_p2 }
 0x13c   : > { %p539_p6 = por %p538_p4, %p537_p11 }
 0x13e   : > { %p540_p8 = pnand %p539_p6, %p533_p5 }
 0x140   : > { %543 = shalt.err (!%p540_p8)
}
 0x141   : > { %401 = dma.vmem_to_hbm [thread:$0]  (%p706_p12), %s772_s26, 128, %s770_s9, %s273_s10  }
 0x142 PF: > { %s298_s18 = sand.u32 1, %s574_s12   ;;  %p832_p10 = scmp.ne.s32.totalorder %s822_s19, 0 }
 0x143   : > { %p833_p13 = scmp.ge.s32.totalorder %s586_s15, 2  ;;  %s299_s20 = scalar_lea.sflag [#allocation4], %s298_s18 }
 0x145   : > { %p412_p3 = pnand %p833_p13, %p832_p10 }
 0x147   : > { %569 = dma.done.wait (!%p412_p3), %s299_s20, 128  }
 0x148   : > { %571 = vsyncadd (!%p412_p3), %s299_s20, 4294967168  ;;  %p17_p7 = scmp.ge.s32.totalorder %s671_s24, 4   ;;  %s834_s12 = smov %s578_s13 }
 0x149   : > { %s835_s13 = smov %s582_s14  ;;  %s836_s14 = smov %s702_s17 }
 0x14a   : > { %s837_s15 = smov %s671_s24  ;;  %19 = sbr.rel (!%p17_p7) target bundleno = 6 (0x6), region = 81 }
 0x151   :  { %304 = vsyncpa [#allocation3], 1 }
 0x152   :  { %306 = vsyncpa [#allocation3 + $0x1], 1 }
 0x153   :  { %307 = vsyncpa [#allocation6], 1 }
 0x154   :  { %308 = vsyncpa [#allocation4], 1 }
 0x155   :  { %310 = vsyncpa [#allocation4 + $0x1], 1 }

</bundles_post_ra>
